<compile_context>
chip_gen: v6e
topology: v6e:2x2x1
jax: 0.10.0
libtpu: 0.0.40
codegen_flags: <defaults>
</compile_context>

<pallas_src>
import math
import functools

import jax
import jax.numpy as jnp
from jax.experimental import pallas as pl
from jax.experimental.pallas import tpu as pltpu

EPS = 1e-5
NEG_INF = float("-inf")
USE_TANH_GELU = False   # optional EUP-friendly GELU (slightly different numerics)


# ----------------------------------------------------------------------------
# Pallas kernels
# ----------------------------------------------------------------------------
def _gpt_layers_kernel(d, nh, use_tanh_gelu,
                       x_ref, vec_ref, wx_ref, wo_ref, w1_ref, w2_ref,
                       o_ref, res_ref):
    """One (batch-block, layer) grid step of the fused transformer stack.

    x_ref:   (TB, L, D) f32   embeddings block (constant across the layer axis)
    vec_ref: (1, 8, 4D) f32   packed per-layer vectors (one vector per row)
    w*_ref:  (1, ...)   bf16  layer `li` slice of the stacked matmul weights
    o_ref:   (TB, L, D) bf16  final residual, written only on the last layer
    res_ref: (TB, L, D) f32   VMEM scratch holding the residual stream
    """
    li = pl.program_id(1)
    h = d // nh
    inv_sqrt_d = 1.0 / math.sqrt(d)
    bf16 = jnp.bfloat16
    tb, l, _ = res_ref.shape

    # Initialize the resident residual stream from the embedding input.
    @pl.when(li == 0)
    def _():
        res_ref[...] = x_ref[...]

    x = res_ref[...].reshape(tb * l, d)                     # (TB*L, D) f32

    # Packed per-layer vectors: one vector per sublane row, padded to 4D lanes.
    vec = vec_ref[0]                                        # (8, 4D) f32
    g1, be1 = vec[0:1, :d], vec[1:2, :d]
    bx = vec[2:3, :3 * d]
    bo = vec[3:4, :d]
    g2, be2 = vec[4:5, :d], vec[5:6, :d]
    b1 = vec[6:7, :]
    b2 = vec[7:8, :d]

    def layer_norm(z, g, b):
        # Matches the PyTorch module exactly: var = E[z^2] - E[z]^2 + eps.
        mu = jnp.mean(z, axis=-1, keepdims=True)
        mu2 = jnp.mean(z * z, axis=-1, keepdims=True)
        var = mu2 - mu * mu + EPS
        return g * ((z - mu) * jax.lax.rsqrt(var)) + b      # rsqrt -> EUP slot

    # ---- attention -------------------------------------------------------
    ln1 = layer_norm(x, g1, be1)
    qkv = jnp.dot(ln1.astype(bf16), wx_ref[0],
                  preferred_element_type=jnp.float32) + bx  # (TB*L, 3D) f32
    qkv3 = qkv.reshape(tb, l, 3 * d)

    def split_heads(off):
        # Head-major batched layout (nh*TB, L, h) via lane slices + leading
        # concat.  TODO(synk): replace with pltpu.einshape once non-minor
        # transposes are needed at larger head counts.
        return jnp.concatenate(
            [qkv3[:, :, off + n * h: off + (n + 1) * h] for n in range(nh)],
            axis=0)

    qh = (split_heads(0) * inv_sqrt_d).astype(bf16)         # 1/sqrt(d) folded in
    kh = split_heads(d).astype(bf16)
    vh = split_heads(2 * d).astype(bf16)

    s = jnp.einsum("nqc,nkc->nqk", qh, kh,
                   preferred_element_type=jnp.float32)      # (nh*TB, L, L) f32

    # Causal mask generated in-kernel (no HBM mask input).
    rows = jax.lax.broadcasted_iota(jnp.int32, (l, l), 0)
    cols = jax.lax.broadcasted_iota(jnp.int32, (l, l), 1)
    s = jnp.where((cols <= rows)[None, :, :], s, NEG_INF)

    s_max = jnp.max(s, axis=-1, keepdims=True)
    e = jnp.exp(s - s_max)                                  # exp(-inf) -> 0
    a = e * pl.reciprocal(jnp.sum(e, axis=-1, keepdims=True), approx=True)

    # TODO(synk): for realistic L, tile this flash-style (online softmax)
    # instead of materializing the full (nh*TB, L, L) score tensor -- required
    # roughly 2x sooner on v7x (64 MiB VMEM) than on v5e/v6e (128 MiB).
    o = jnp.einsum("nqk,nkc->nqc", a.astype(bf16), vh,
                   preferred_element_type=jnp.float32)      # (nh*TB, L, h) f32

    mha = jnp.concatenate([o[n * tb:(n + 1) * tb] for n in range(nh)],
                          axis=-1)                          # (TB, L, D)
    x = x + jnp.dot(mha.reshape(tb * l, d).astype(bf16), wo_ref[0],
                    preferred_element_type=jnp.float32) + bo

    # ---- FFN: Linear(d, 4d) -> GELU -> Linear(4d, d) ----------------------
    ln2 = layer_norm(x, g2, be2)
    hid = jnp.dot(ln2.astype(bf16), w1_ref[0],
                  preferred_element_type=jnp.float32) + b1
    if use_tanh_gelu:
        gelu = jax.nn.gelu(hid, approximate=True)           # tanh -> EUP slot
    else:
        gelu = hid * 0.5 * (1.0 + jax.lax.erf(hid / math.sqrt(2.0)))  # exact
    ffn = jnp.dot(gelu.astype(bf16), w2_ref[0],
                  preferred_element_type=jnp.float32) + b2

    xo = x + ffn
    res_ref[...] = xo.reshape(tb, l, d)

    # Only the final residual hits HBM, already in bf16 for the vocab matmul.
    @pl.when(li == pl.num_programs(1) - 1)
    def _():
        o_ref[...] = xo.reshape(tb, l, d).astype(o_ref.dtype)


def _out_proj_kernel(x_ref, w_ref, o_ref):
    tb, l, d = x_ref.shape
    y = jnp.dot(x_ref[...].reshape(tb * l, d), w_ref[...],
                preferred_element_type=jnp.float32)
    o_ref[...] = y.reshape(tb, l, y.shape[-1])


# ----------------------------------------------------------------------------
# Pallas call wrappers
# ----------------------------------------------------------------------------
def _pick_tb(b, l, target_m=256):
    """Largest batch block dividing b with TB*L <= ~256 (fills the MXU M dim)."""
    cands = [t for t in range(1, b + 1) if b % t == 0 and t * l <= target_m]
    return max(cands) if cands else 1


def run_layers(x, w, d, nh):
    """All NL transformer blocks in one fused pallas_call, grid = (B//TB, NL)."""
    b, l, _ = x.shape
    nl = w["wx"].shape[0]
    tb = _pick_tb(b, l)

    x_spec = pl.BlockSpec((tb, l, d), lambda bb, ll: (bb, 0, 0))

    def lspec(a):
        return pl.BlockSpec((1,) + a.shape[1:], lambda bb, ll: (ll, 0, 0))

    return pl.pallas_call(
        functools.partial(_gpt_layers_kernel, d, nh, USE_TANH_GELU),
        out_shape=jax.ShapeDtypeStruct((b, l, d), jnp.bfloat16),
        grid=(b // tb, nl),
        in_specs=[x_spec, lspec(w["vec"]), lspec(w["wx"]), lspec(w["wo"]),
                  lspec(w["w1"]), lspec(w["w2"])],
        out_specs=pl.BlockSpec((tb, l, d), lambda bb, ll: (bb, 0, 0)),
        scratch_shapes=[pltpu.VMEM((tb, l, d), jnp.float32)],
        compiler_params=pltpu.CompilerParams(
            # Batch blocks split across TensorCores (v7x megacore); the layer
            # axis carries the resident residual so it must be "arbitrary".
            dimension_semantics=("parallel", "arbitrary"),
            # Explicit VMEM cap (fits every generation incl. v7x's 64 MiB).
            vmem_limit_bytes=32 * 1024 * 1024),
    )(x, w["vec"], w["wx"], w["wo"], w["w1"], w["w2"])


def run_out_proj(x_bf16, w_bf16, tile_v=512):
    """Final vocab projection: grid over vocab tiles only, so the (D, V)
    weight streams from HBM exactly once; all B*L rows feed the MXU M dim.
    (For very large B, add a batch-block axis *outside* the vocab axis.)"""
    b, l, d = x_bf16.shape
    v = w_bf16.shape[1]
    tv = min(tile_v, v)
    return pl.pallas_call(
        _out_proj_kernel,
        out_shape=jax.ShapeDtypeStruct((b, l, v), jnp.float32),
        grid=(pl.cdiv(v, tv),),
        in_specs=[pl.BlockSpec((b, l, d), lambda j: (0, 0, 0)),
                  pl.BlockSpec((d, tv), lambda j: (0, j))],
        out_specs=pl.BlockSpec((b, l, tv), lambda j: (0, 0, j)),
        compiler_params=pltpu.CompilerParams(
            dimension_semantics=("parallel",),
            vmem_limit_bytes=32 * 1024 * 1024),
    )(x_bf16, w_bf16)


# ----------------------------------------------------------------------------
# Parameters (deterministic, mirrors GPT.__init__ shapes; f32 masters)
# ----------------------------------------------------------------------------
def init_params(key, d, nh, nl, l, v):
    k_emb, k_pos, k_out, k_layers = jax.random.split(key, 4)
    params = {
        "emb": 0.02 * jax.random.normal(k_emb, (v, d), jnp.float32),
        "pos": 0.02 * jax.random.normal(k_pos, (l, d), jnp.float32),
        # nn.Linear(d, v, bias=False) weight is (v, d); store transposed (d, v)
        "out_w": (0.02 * jax.random.normal(k_out, (v, d), jnp.float32)).T,
        "layers": [],
    }
    layer_keys = jax.random.split(k_layers, nl)
    for i in range(nl):
        ks = jax.random.split(layer_keys[i], 4)
        params["layers"].append(dict(
            g1=jnp.ones((1, d), jnp.float32), be1=jnp.zeros((1, d), jnp.float32),
            wx=(0.02 * jax.random.normal(ks[0], (3 * d, d), jnp.float32)).T,   # (d, 3d)
            bx=jnp.zeros((1, 3 * d), jnp.float32),
            wo=(0.02 * jax.random.normal(ks[1], (d, d), jnp.float32)).T,       # (d, d)
            bo=jnp.zeros((1, d), jnp.float32),
            g2=jnp.ones((1, d), jnp.float32), be2=jnp.zeros((1, d), jnp.float32),
            w1=(0.02 * jax.random.normal(ks[2], (4 * d, d), jnp.float32)).T,   # (d, 4d)
            b1=jnp.zeros((1, 4 * d), jnp.float32),
            w2=(0.02 * jax.random.normal(ks[3], (d, 4 * d), jnp.float32)).T,   # (4d, d)
            b2=jnp.zeros((1, d), jnp.float32),
        ))
    return params


def prepare_weights(params, d):
    """One-time weight prep (hoisted out of the forward path):
    - stack matmul weights along a leading layer axis, cast to bf16;
    - pack the 8 small per-layer vectors into one (NL, 8, 4D) f32 array;
    - pre-cast the vocab projection weight to bf16."""
    layers = params["layers"]
    stacked = {n: jnp.stack([lp[n] for lp in layers], axis=0).astype(jnp.bfloat16)
               for n in ("wx", "wo", "w1", "w2")}

    width = 4 * d
    def pack(lp):
        rows = [lp["g1"], lp["be1"], lp["bx"], lp["bo"],
                lp["g2"], lp["be2"], lp["b1"], lp["b2"]]
        return jnp.stack(
            [jnp.pad(r.reshape(-1), (0, width - r.size)) for r in rows], axis=0)

    stacked["vec"] = jnp.stack([pack(lp) for lp in layers], axis=0).astype(jnp.float32)

    return {"layers": stacked,
            "out_w": params["out_w"].astype(jnp.bfloat16),
            "emb": params["emb"], "pos": params["pos"]}


def causal_mask(l):
    tril = jnp.tril(jnp.ones((l, l), jnp.float32))
    return jnp.where(tril == 1.0, 0.0, -jnp.inf).astype(jnp.float32)


# ----------------------------------------------------------------------------
# GPT forward (Pallas) and pure-JAX f32 reference
# ----------------------------------------------------------------------------
def gpt_forward(prep, t, d, nh, l_max):
    if t.ndim == 1:
        t = t[None, :]
    l = t.shape[-1]
    assert l <= l_max
    # glue: embedding gather + learned positions (no tile-friendly Pallas gather here)
    x = prep["emb"][t] + prep["pos"][:l]
    x = run_layers(x, prep["layers"], d, nh)          # bf16 residual out
    logits = run_out_proj(x, prep["out_w"])
    return jnp.squeeze(logits)


def gpt_reference(params, t, d, nh, l_max):
    """Pure-JAX f32 mirror of the PyTorch math, for verification."""
    if t.ndim == 1:
        t = t[None, :]
    l = t.shape[-1]
    h = d // nh
    x = params["emb"][t] + params["pos"][:l]
    m = causal_mask(l)

    def ln(xx, g, b):
        mu = jnp.mean(xx, axis=-1, keepdims=True)
        mu2 = jnp.mean(xx * xx, axis=-1, keepdims=True)
        var = mu2 - mu * mu + EPS
        return g * ((xx - mu) / jnp.sqrt(var)) + b

    for p in params["layers"]:
        qkv = ln(x, p["g1"], p["be1"]) @ p["wx"] + p["bx"]        # (B, L, 3D)
        q, k, v = qkv[..., :d], qkv[..., d:2 * d], qkv[..., 2 * d:]
        b_, l_, _ = q.shape
        qh = q.reshape(b_, l_, nh, h).transpose(0, 2, 1, 3)       # (B, nh, L, h)
        kh = k.reshape(b_, l_, nh, h).transpose(0, 2, 1, 3)
        vh = v.reshape(b_, l_, nh, h).transpose(0, 2, 1, 3)
        s = (jnp.einsum("bnik,bnjk->bnij", qh, kh) + m) / math.sqrt(d)
        a = jax.nn.softmax(s, axis=-1)
        o = jnp.einsum("bnij,bnjk->bnik", a, vh)                  # (B, nh, L, h)
        mha = o.transpose(0, 2, 1, 3).reshape(b_, l_, d)
        x = x + mha @ p["wo"] + p["bo"]
        hid = ln(x, p["g2"], p["be2"]) @ p["w1"] + p["b1"]
        gelu = hid * 0.5 * (1.0 + jax.lax.erf(hid / math.sqrt(2.0)))
        x = x + gelu @ p["w2"] + p["b2"]
    return jnp.squeeze(x @ params["out_w"])


# TODO(synk): loss_fn (cross-entropy / ICL score) not implemented; forward only.

# ----------------------------------------------------------------------------
if __name__ == "__main__":
    D, NH, NL, L, V = 32, 4, 2, 8, 64
    B = 2

    key = jax.random.PRNGKey(0)
    pkey, tkey = jax.random.split(key)
    params = init_params(pkey, D, NH, NL, L, V)
    prep = prepare_weights(params, D)        # weight prep done once, not per call
    tokens = jax.random.randint(tkey, (B, L), 0, V, dtype=jnp.int32)

    out = gpt_forward(prep, tokens, D, NH, L)
    out = jax.block_until_ready(out)

    ref = gpt_reference(params, tokens, D, NH, L)
    assert out.shape == (B, L, V), out.shape
    # bf16 matmul operands (f32 accumulation) vs f32 reference: errors at this
    # scale are O(1e-4); 2e-3 gives comfortable margin while staying meaningful.
    max_err = float(jnp.max(jnp.abs(out - ref)))
    assert max_err < 2e-3, f"mismatch vs reference: {max_err}"

    print("KERNEL_OK")
</pallas_src>

<mosaic_0001>
module attributes {stable_mosaic.version = 11 : i64} {
  func.func @_gpt_layers_kernel(%arg0: i32, %arg1: i32, %arg2: memref<2x8x32xf32, #tpu.memory_space<vmem>>, %arg3: memref<1x8x128xf32, #tpu.memory_space<vmem>>, %arg4: memref<1x32x96xbf16, #tpu.memory_space<vmem>>, %arg5: memref<1x32x32xbf16, #tpu.memory_space<vmem>>, %arg6: memref<1x32x128xbf16, #tpu.memory_space<vmem>>, %arg7: memref<1x128x32xbf16, #tpu.memory_space<vmem>>, %arg8: memref<2x8x32xbf16, #tpu.memory_space<vmem>>, %arg9: memref<2x8x32xf32, #tpu.memory_space<vmem>>) attributes {dimension_semantics = [#tpu.dimension_semantics<parallel>, #tpu.dimension_semantics<arbitrary>], iteration_bounds = array<i64: 1, 2>, scalar_prefetch = 0 : i64, scratch_operands = 1 : i64, tpu.core_type = #tpu.core_type<tc>, window_params = [{transform_indices = @transform_0, window_bounds = array<i64: 2, 8, 32>}, {transform_indices = @transform_1, window_bounds = array<i64: 1, 8, 128>}, {transform_indices = @transform_2, window_bounds = array<i64: 1, 32, 96>}, {transform_indices = @transform_3, window_bounds = array<i64: 1, 32, 32>}, {transform_indices = @transform_4, window_bounds = array<i64: 1, 32, 128>}, {transform_indices = @transform_5, window_bounds = array<i64: 1, 128, 32>}, {transform_indices = @transform_6, window_bounds = array<i64: 2, 8, 32>}]} {
    %c0_i32 = arith.constant 0 : i32
    %0 = arith.cmpi eq, %arg1, %c0_i32 : i32
    %1 = arith.extui %0 : i1 to i32
    %c0_i32_0 = arith.constant 0 : i32
    %2 = arith.cmpi ne, %1, %c0_i32_0 : i32
    scf.if %2 {
      %c0_44 = arith.constant 0 : index
      %c0_45 = arith.constant 0 : index
      %c0_46 = arith.constant 0 : index
      %146 = vector.load %arg2[%c0_44, %c0_45, %c0_46] : memref<2x8x32xf32, #tpu.memory_space<vmem>>, vector<2x8x32xf32>
      %c0_47 = arith.constant 0 : index
      %c0_48 = arith.constant 0 : index
      %c0_49 = arith.constant 0 : index
      %147 = vector.load %arg9[%c0_47, %c0_48, %c0_49] : memref<2x8x32xf32, #tpu.memory_space<vmem>>, vector<2x8x32xf32>
      tpu.vector_store %arg9[%c0_47, %c0_48, %c0_49], %146 {strides = array<i32>} : memref<2x8x32xf32, #tpu.memory_space<vmem>>, vector<2x8x32xf32>,
    } else {
    }
    %c0 = arith.constant 0 : index
    %c0_1 = arith.constant 0 : index
    %c0_2 = arith.constant 0 : index
    %3 = vector.load %arg9[%c0, %c0_1, %c0_2] : memref<2x8x32xf32, #tpu.memory_space<vmem>>, vector<2x8x32xf32>
    %4 = vector.shape_cast %3 : vector<2x8x32xf32> to vector<16x32xf32>
    %c0_3 = arith.constant 0 : index
    %c0_4 = arith.constant 0 : index
    %c0_5 = arith.constant 0 : index
    %5 = vector.load %arg3[%c0_3, %c0_4, %c0_5] : memref<1x8x128xf32, #tpu.memory_space<vmem>>, vector<1x8x128xf32>
    %6 = vector.shape_cast %5 : vector<1x8x128xf32> to vector<8x128xf32>
    %7 = vector.extract_strided_slice %6 {offsets = [0, 0], sizes = [1, 32], strides = [1, 1]} : vector<8x128xf32> to vector<1x32xf32>
    %8 = vector.extract_strided_slice %6 {offsets = [1, 0], sizes = [1, 32], strides = [1, 1]} : vector<8x128xf32> to vector<1x32xf32>
    %9 = vector.extract_strided_slice %6 {offsets = [2, 0], sizes = [1, 96], strides = [1, 1]} : vector<8x128xf32> to vector<1x96xf32>
    %10 = vector.extract_strided_slice %6 {offsets = [3, 0], sizes = [1, 32], strides = [1, 1]} : vector<8x128xf32> to vector<1x32xf32>
    %11 = vector.extract_strided_slice %6 {offsets = [4, 0], sizes = [1, 32], strides = [1, 1]} : vector<8x128xf32> to vector<1x32xf32>
    %12 = vector.extract_strided_slice %6 {offsets = [5, 0], sizes = [1, 32], strides = [1, 1]} : vector<8x128xf32> to vector<1x32xf32>
    %13 = vector.extract_strided_slice %6 {offsets = [6, 0], sizes = [1, 128], strides = [1, 1]} : vector<8x128xf32> to vector<1x128xf32>
    %14 = vector.extract_strided_slice %6 {offsets = [7, 0], sizes = [1, 32], strides = [1, 1]} : vector<8x128xf32> to vector<1x32xf32>
    %cst = arith.constant dense<0.000000e+00> : vector<16xf32>
    %15 = vector.multi_reduction <add>, %4, %cst [1] : vector<16x32xf32> to vector<16xf32>
    %16 = vector.shape_cast %15 : vector<16xf32> to vector<16x1xf32>
    %cst_6 = arith.constant 3.200000e+01 : f32
    %17 = vector.broadcast %cst_6 : f32 to vector<16x1xf32>
    %18 = arith.divf %16, %17 : vector<16x1xf32>
    %19 = arith.mulf %4, %4 : vector<16x32xf32>
    %cst_7 = arith.constant dense<0.000000e+00> : vector<16xf32>
    %20 = vector.multi_reduction <add>, %19, %cst_7 [1] : vector<16x32xf32> to vector<16xf32>
    %21 = vector.shape_cast %20 : vector<16xf32> to vector<16x1xf32>
    %cst_8 = arith.constant 3.200000e+01 : f32
    %22 = vector.broadcast %cst_8 : f32 to vector<16x1xf32>
    %23 = arith.divf %21, %22 : vector<16x1xf32>
    %24 = arith.mulf %18, %18 : vector<16x1xf32>
    %25 = arith.subf %23, %24 : vector<16x1xf32>
    %cst_9 = arith.constant 9.99999974E-6 : f32
    %26 = vector.broadcast %cst_9 : f32 to vector<16x1xf32>
    %27 = arith.addf %25, %26 : vector<16x1xf32>
    %28 = vector.broadcast %18 : vector<16x1xf32> to vector<16x32xf32>
    %29 = arith.subf %4, %28 : vector<16x32xf32>
    %30 = math.rsqrt %27 : vector<16x1xf32>
    %31 = vector.broadcast %30 : vector<16x1xf32> to vector<16x32xf32>
    %32 = arith.mulf %29, %31 : vector<16x32xf32>
    %33 = vector.broadcast %7 : vector<1x32xf32> to vector<16x32xf32>
    %34 = arith.mulf %33, %32 : vector<16x32xf32>
    %35 = vector.broadcast %8 : vector<1x32xf32> to vector<16x32xf32>
    %36 = arith.addf %34, %35 : vector<16x32xf32>
    %37 = arith.truncf %36 : vector<16x32xf32> to vector<16x32xbf16>
    %c0_10 = arith.constant 0 : index
    %c0_11 = arith.constant 0 : index
    %c0_12 = arith.constant 0 : index
    %38 = vector.load %arg4[%c0_10, %c0_11, %c0_12] : memref<1x32x96xbf16, #tpu.memory_space<vmem>>, vector<1x32x96xbf16>
    %39 = vector.shape_cast %38 : vector<1x32x96xbf16> to vector<32x96xbf16>
    %cst_13 = arith.constant dense<0.000000e+00> : vector<16x96xf32>
    %40 = tpu.matmul %37, %39, %cst_13 {dimension_numbers = #tpu.dot_dimension_numbers<[1], [0], [0], [1], [0, 0, 1, 1], [], []>} : vector<16x32xbf16>, vector<32x96xbf16>, vector<16x96xf32> -> vector<16x96xf32>
    %41 = vector.broadcast %9 : vector<1x96xf32> to vector<16x96xf32>
    %42 = arith.addf %40, %41 : vector<16x96xf32>
    %43 = vector.shape_cast %42 : vector<16x96xf32> to vector<2x8x96xf32>
    %44 = vector.extract_strided_slice %43 {offsets = [0, 0, 0], sizes = [2, 8, 8], strides = [1, 1, 1]} : vector<2x8x96xf32> to vector<2x8x8xf32>
    %45 = vector.extract_strided_slice %43 {offsets = [0, 0, 8], sizes = [2, 8, 8], strides = [1, 1, 1]} : vector<2x8x96xf32> to vector<2x8x8xf32>
    %46 = vector.extract_strided_slice %43 {offsets = [0, 0, 16], sizes = [2, 8, 8], strides = [1, 1, 1]} : vector<2x8x96xf32> to vector<2x8x8xf32>
    %47 = vector.extract_strided_slice %43 {offsets = [0, 0, 24], sizes = [2, 8, 8], strides = [1, 1, 1]} : vector<2x8x96xf32> to vector<2x8x8xf32>
    %48 = tpu.concatenate %44, %45, %46, %47 in 0 : vector<2x8x8xf32>, vector<2x8x8xf32>, vector<2x8x8xf32>, vector<2x8x8xf32> -> vector<8x8x8xf32>
    %cst_14 = arith.constant 0.176776692 : f32
    %49 = vector.broadcast %cst_14 : f32 to vector<8x8x8xf32>
    %50 = arith.mulf %48, %49 : vector<8x8x8xf32>
    %51 = arith.truncf %50 : vector<8x8x8xf32> to vector<8x8x8xbf16>
    %52 = vector.extract_strided_slice %43 {offsets = [0, 0, 32], sizes = [2, 8, 8], strides = [1, 1, 1]} : vector<2x8x96xf32> to vector<2x8x8xf32>
    %53 = vector.extract_strided_slice %43 {offsets = [0, 0, 40], sizes = [2, 8, 8], strides = [1, 1, 1]} : vector<2x8x96xf32> to vector<2x8x8xf32>
    %54 = vector.extract_strided_slice %43 {offsets = [0, 0, 48], sizes = [2, 8, 8], strides = [1, 1, 1]} : vector<2x8x96xf32> to vector<2x8x8xf32>
    %55 = vector.extract_strided_slice %43 {offsets = [0, 0, 56], sizes = [2, 8, 8], strides = [1, 1, 1]} : vector<2x8x96xf32> to vector<2x8x8xf32>
    %56 = tpu.concatenate %52, %53, %54, %55 in 0 : vector<2x8x8xf32>, vector<2x8x8xf32>, vector<2x8x8xf32>, vector<2x8x8xf32> -> vector<8x8x8xf32>
    %57 = arith.truncf %56 : vector<8x8x8xf32> to vector<8x8x8xbf16>
    %58 = vector.extract_strided_slice %43 {offsets = [0, 0, 64], sizes = [2, 8, 8], strides = [1, 1, 1]} : vector<2x8x96xf32> to vector<2x8x8xf32>
    %59 = vector.extract_strided_slice %43 {offsets = [0, 0, 72], sizes = [2, 8, 8], strides = [1, 1, 1]} : vector<2x8x96xf32> to vector<2x8x8xf32>
    %60 = vector.extract_strided_slice %43 {offsets = [0, 0, 80], sizes = [2, 8, 8], strides = [1, 1, 1]} : vector<2x8x96xf32> to vector<2x8x8xf32>
    %61 = vector.extract_strided_slice %43 {offsets = [0, 0, 88], sizes = [2, 8, 8], strides = [1, 1, 1]} : vector<2x8x96xf32> to vector<2x8x8xf32>
    %62 = tpu.concatenate %58, %59, %60, %61 in 0 : vector<2x8x8xf32>, vector<2x8x8xf32>, vector<2x8x8xf32>, vector<2x8x8xf32> -> vector<8x8x8xf32>
    %63 = arith.truncf %62 : vector<8x8x8xf32> to vector<8x8x8xbf16>
    "tpu.trace_start"() <{level = 10 : i32, message = "nqc,nkc->nqk"}> : () -> ()
    %cst_15 = arith.constant dense<0.000000e+00> : vector<8x8x8xf32>
    %64 = tpu.matmul %51, %57, %cst_15 {dimension_numbers = #tpu.dot_dimension_numbers<[2], [2], [1], [1], [0, 0, 0, 1, 1, 1], [0], [0]>} : vector<8x8x8xbf16>, vector<8x8x8xbf16>, vector<8x8x8xf32> -> vector<8x8x8xf32>
    "tpu.trace_stop"() : () -> ()
    %65 = tpu.iota {dimensions = array<i32: 0>} : vector<8x8xi32>
    %66 = tpu.iota {dimensions = array<i32: 1>} : vector<8x8xi32>
    %67 = arith.cmpi sle, %66, %65 : vector<8x8xi32>
    %68 = vector.shape_cast %67 : vector<8x8xi1> to vector<1x8x8xi1>
    %cst_16 = arith.constant 0xFF800000 : f32
    %69 = vector.shape_cast %68 : vector<1x8x8xi1> to vector<1x8x8xi1>
    %70 = vector.broadcast %69 : vector<1x8x8xi1> to vector<8x8x8xi1>
    %71 = vector.broadcast %cst_16 : f32 to vector<8x8x8xf32>
    %72 = arith.select %70, %64, %71 : vector<8x8x8xi1>, vector<8x8x8xf32>
    %cst_17 = arith.constant dense<0xFF800000> : vector<8x8xf32>
    %73 = vector.multi_reduction <maximumf>, %72, %cst_17 [2] : vector<8x8x8xf32> to vector<8x8xf32>
    %74 = vector.shape_cast %73 : vector<8x8xf32> to vector<8x8x1xf32>
    %75 = vector.broadcast %74 : vector<8x8x1xf32> to vector<8x8x8xf32>
    %76 = arith.subf %72, %75 : vector<8x8x8xf32>
    %77 = math.exp %76 : vector<8x8x8xf32>
    %cst_18 = arith.constant dense<0.000000e+00> : vector<8x8xf32>
    %78 = vector.multi_reduction <add>, %77, %cst_18 [2] : vector<8x8x8xf32> to vector<8x8xf32>
    %79 = vector.shape_cast %78 : vector<8x8xf32> to vector<8x8x1xf32>
    %80 = tpu.reciprocal %79 {approx = true} : vector<8x8x1xf32> -> vector<8x8x1xf32>
    %81 = vector.broadcast %80 : vector<8x8x1xf32> to vector<8x8x8xf32>
    %82 = arith.mulf %77, %81 : vector<8x8x8xf32>
    %83 = arith.truncf %82 : vector<8x8x8xf32> to vector<8x8x8xbf16>
    "tpu.trace_start"() <{level = 10 : i32, message = "nqk,nkc->nqc"}> : () -> ()
    %cst_19 = arith.constant dense<0.000000e+00> : vector<8x8x8xf32>
    %84 = tpu.matmul %83, %63, %cst_19 {dimension_numbers = #tpu.dot_dimension_numbers<[2], [1], [1], [2], [0, 0, 0, 1, 1, 2], [0], [0]>} : vector<8x8x8xbf16>, vector<8x8x8xbf16>, vector<8x8x8xf32> -> vector<8x8x8xf32>
    "tpu.trace_stop"() : () -> ()
    %85 = vector.extract_strided_slice %84 {offsets = [0, 0, 0], sizes = [2, 8, 8], strides = [1, 1, 1]} : vector<8x8x8xf32> to vector<2x8x8xf32>
    %86 = vector.extract_strided_slice %84 {offsets = [2, 0, 0], sizes = [2, 8, 8], strides = [1, 1, 1]} : vector<8x8x8xf32> to vector<2x8x8xf32>
    %87 = vector.extract_strided_slice %84 {offsets = [4, 0, 0], sizes = [2, 8, 8], strides = [1, 1, 1]} : vector<8x8x8xf32> to vector<2x8x8xf32>
    %88 = vector.extract_strided_slice %84 {offsets = [6, 0, 0], sizes = [2, 8, 8], strides = [1, 1, 1]} : vector<8x8x8xf32> to vector<2x8x8xf32>
    %89 = tpu.concatenate %85, %86, %87, %88 in 2 : vector<2x8x8xf32>, vector<2x8x8xf32>, vector<2x8x8xf32>, vector<2x8x8xf32> -> vector<2x8x32xf32>
    %90 = vector.shape_cast %89 : vector<2x8x32xf32> to vector<16x32xf32>
    %91 = arith.truncf %90 : vector<16x32xf32> to vector<16x32xbf16>
    %c0_20 = arith.constant 0 : index
    %c0_21 = arith.constant 0 : index
    %c0_22 = arith.constant 0 : index
    %92 = vector.load %arg5[%c0_20, %c0_21, %c0_22] : memref<1x32x32xbf16, #tpu.memory_space<vmem>>, vector<1x32x32xbf16>
    %93 = vector.shape_cast %92 : vector<1x32x32xbf16> to vector<32x32xbf16>
    %cst_23 = arith.constant dense<0.000000e+00> : vector<16x32xf32>
    %94 = tpu.matmul %91, %93, %cst_23 {dimension_numbers = #tpu.dot_dimension_numbers<[1], [0], [0], [1], [0, 0, 1, 1], [], []>} : vector<16x32xbf16>, vector<32x32xbf16>, vector<16x32xf32> -> vector<16x32xf32>
    %95 = arith.addf %4, %94 : vector<16x32xf32>
    %96 = vector.broadcast %10 : vector<1x32xf32> to vector<16x32xf32>
    %97 = arith.addf %95, %96 : vector<16x32xf32>
    %cst_24 = arith.constant dense<0.000000e+00> : vector<16xf32>
    %98 = vector.multi_reduction <add>, %97, %cst_24 [1] : vector<16x32xf32> to vector<16xf32>
    %99 = vector.shape_cast %98 : vector<16xf32> to vector<16x1xf32>
    %cst_25 = arith.constant 3.200000e+01 : f32
    %100 = vector.broadcast %cst_25 : f32 to vector<16x1xf32>
    %101 = arith.divf %99, %100 : vector<16x1xf32>
    %102 = arith.mulf %97, %97 : vector<16x32xf32>
    %cst_26 = arith.constant dense<0.000000e+00> : vector<16xf32>
    %103 = vector.multi_reduction <add>, %102, %cst_26 [1] : vector<16x32xf32> to vector<16xf32>
    %104 = vector.shape_cast %103 : vector<16xf32> to vector<16x1xf32>
    %cst_27 = arith.constant 3.200000e+01 : f32
    %105 = vector.broadcast %cst_27 : f32 to vector<16x1xf32>
    %106 = arith.divf %104, %105 : vector<16x1xf32>
    %107 = arith.mulf %101, %101 : vector<16x1xf32>
    %108 = arith.subf %106, %107 : vector<16x1xf32>
    %cst_28 = arith.constant 9.99999974E-6 : f32
    %109 = vector.broadcast %cst_28 : f32 to vector<16x1xf32>
    %110 = arith.addf %108, %109 : vector<16x1xf32>
    %111 = vector.broadcast %101 : vector<16x1xf32> to vector<16x32xf32>
    %112 = arith.subf %97, %111 : vector<16x32xf32>
    %113 = math.rsqrt %110 : vector<16x1xf32>
    %114 = vector.broadcast %113 : vector<16x1xf32> to vector<16x32xf32>
    %115 = arith.mulf %112, %114 : vector<16x32xf32>
    %116 = vector.broadcast %11 : vector<1x32xf32> to vector<16x32xf32>
    %117 = arith.mulf %116, %115 : vector<16x32xf32>
    %118 = vector.broadcast %12 : vector<1x32xf32> to vector<16x32xf32>
    %119 = arith.addf %117, %118 : vector<16x32xf32>
    %120 = arith.truncf %119 : vector<16x32xf32> to vector<16x32xbf16>
    %c0_29 = arith.constant 0 : index
    %c0_30 = arith.constant 0 : index
    %c0_31 = arith.constant 0 : index
    %121 = vector.load %arg6[%c0_29, %c0_30, %c0_31] : memref<1x32x128xbf16, #tpu.memory_space<vmem>>, vector<1x32x128xbf16>
    %122 = vector.shape_cast %121 : vector<1x32x128xbf16> to vector<32x128xbf16>
    %cst_32 = arith.constant dense<0.000000e+00> : vector<16x128xf32>
    %123 = tpu.matmul %120, %122, %cst_32 {dimension_numbers = #tpu.dot_dimension_numbers<[1], [0], [0], [1], [0, 0, 1, 1], [], []>} : vector<16x32xbf16>, vector<32x128xbf16>, vector<16x128xf32> -> vector<16x128xf32>
    %124 = vector.broadcast %13 : vector<1x128xf32> to vector<16x128xf32>
    %125 = arith.addf %123, %124 : vector<16x128xf32>
    %cst_33 = arith.constant 5.000000e-01 : f32
    %126 = vector.broadcast %cst_33 : f32 to vector<16x128xf32>
    %127 = arith.mulf %125, %126 : vector<16x128xf32>
    %cst_34 = arith.constant 1.41421354 : f32
    %128 = vector.broadcast %cst_34 : f32 to vector<16x128xf32>
    %129 = arith.divf %125, %128 : vector<16x128xf32>
    %130 = math.erf %129 : vector<16x128xf32>
    %cst_35 = arith.constant 1.000000e+00 : f32
    %131 = vector.broadcast %cst_35 : f32 to vector<16x128xf32>
    %132 = arith.addf %131, %130 : vector<16x128xf32>
    %133 = arith.mulf %127, %132 : vector<16x128xf32>
    %134 = arith.truncf %133 : vector<16x128xf32> to vector<16x128xbf16>
    %c0_36 = arith.constant 0 : index
    %c0_37 = arith.constant 0 : index
    %c0_38 = arith.constant 0 : index
    %135 = vector.load %arg7[%c0_36, %c0_37, %c0_38] : memref<1x128x32xbf16, #tpu.memory_space<vmem>>, vector<1x128x32xbf16>
    %136 = vector.shape_cast %135 : vector<1x128x32xbf16> to vector<128x32xbf16>
    %cst_39 = arith.constant dense<0.000000e+00> : vector<16x32xf32>
    %137 = tpu.matmul %134, %136, %cst_39 {dimension_numbers = #tpu.dot_dimension_numbers<[1], [0], [0], [1], [0, 0, 1, 1], [], []>} : vector<16x128xbf16>, vector<128x32xbf16>, vector<16x32xf32> -> vector<16x32xf32>
    %138 = vector.broadcast %14 : vector<1x32xf32> to vector<16x32xf32>
    %139 = arith.addf %137, %138 : vector<16x32xf32>
    %140 = arith.addf %97, %139 : vector<16x32xf32>
    %141 = vector.shape_cast %140 : vector<16x32xf32> to vector<2x8x32xf32>
    %c0_40 = arith.constant 0 : index
    %c0_41 = arith.constant 0 : index
    %c0_42 = arith.constant 0 : index
    %142 = vector.load %arg9[%c0_40, %c0_41, %c0_42] : memref<2x8x32xf32, #tpu.memory_space<vmem>>, vector<2x8x32xf32>
    tpu.vector_store %arg9[%c0_40, %c0_41, %c0_42], %141 {strides = array<i32>} : memref<2x8x32xf32, #tpu.memory_space<vmem>>, vector<2x8x32xf32>,
    %c1_i32 = arith.constant 1 : i32
    %143 = arith.cmpi eq, %arg1, %c1_i32 : i32
    %144 = arith.extui %143 : i1 to i32
    %c0_i32_43 = arith.constant 0 : i32
    %145 = arith.cmpi ne, %144, %c0_i32_43 : i32
    scf.if %145 {
      %146 = vector.shape_cast %140 : vector<16x32xf32> to vector<2x8x32xf32>
      %147 = arith.truncf %146 : vector<2x8x32xf32> to vector<2x8x32xbf16>
      %c0_44 = arith.constant 0 : index
      %c0_45 = arith.constant 0 : index
      %c0_46 = arith.constant 0 : index
      %148 = vector.load %arg8[%c0_44, %c0_45, %c0_46] : memref<2x8x32xbf16, #tpu.memory_space<vmem>>, vector<2x8x32xbf16>
      tpu.vector_store %arg8[%c0_44, %c0_45, %c0_46], %147 {strides = array<i32>} : memref<2x8x32xbf16, #tpu.memory_space<vmem>>, vector<2x8x32xbf16>,
    } else {
    }
    return
  }
  func.func @transform_0(%arg0: i32, %arg1: i32) -> (i32, i32, i32) {
    %c0_i32 = arith.constant 0 : i32
    %c0_i32_0 = arith.constant 0 : i32
    %c0_i32_1 = arith.constant 0 : i32
    return %arg0, %c0_i32, %c0_i32_0 : i32, i32, i32
  }
  func.func @transform_1(%arg0: i32, %arg1: i32) -> (i32, i32, i32) {
    %c0_i32 = arith.constant 0 : i32
    %c0_i32_0 = arith.constant 0 : i32
    %c0_i32_1 = arith.constant 0 : i32
    return %arg1, %c0_i32, %c0_i32_0 : i32, i32, i32
  }
  func.func @transform_2(%arg0: i32, %arg1: i32) -> (i32, i32, i32) {
    %c0_i32 = arith.constant 0 : i32
    %c0_i32_0 = arith.constant 0 : i32
    %c0_i32_1 = arith.constant 0 : i32
    return %arg1, %c0_i32, %c0_i32_0 : i32, i32, i32
  }
  func.func @transform_3(%arg0: i32, %arg1: i32) -> (i32, i32, i32) {
    %c0_i32 = arith.constant 0 : i32
    %c0_i32_0 = arith.constant 0 : i32
    %c0_i32_1 = arith.constant 0 : i32
    return %arg1, %c0_i32, %c0_i32_0 : i32, i32, i32
  }
  func.func @transform_4(%arg0: i32, %arg1: i32) -> (i32, i32, i32) {
    %c0_i32 = arith.constant 0 : i32
    %c0_i32_0 = arith.constant 0 : i32
    %c0_i32_1 = arith.constant 0 : i32
    return %arg1, %c0_i32, %c0_i32_0 : i32, i32, i32
  }
  func.func @transform_5(%arg0: i32, %arg1: i32) -> (i32, i32, i32) {
    %c0_i32 = arith.constant 0 : i32
    %c0_i32_0 = arith.constant 0 : i32
    %c0_i32_1 = arith.constant 0 : i32
    return %arg1, %c0_i32, %c0_i32_0 : i32, i32, i32
  }
  func.func @transform_6(%arg0: i32, %arg1: i32) -> (i32, i32, i32) {
    %c0_i32 = arith.constant 0 : i32
    %c0_i32_0 = arith.constant 0 : i32
    %c0_i32_1 = arith.constant 0 : i32
    return %arg0, %c0_i32, %c0_i32_0 : i32, i32, i32
  }
}

</mosaic_0001>

<bundles_post_ra>
// kernel: tpu_custom_call.1
= control target key start
LH: loop header
LB: loop body
LE: loop exit
PB: predicated region body
PF: predicated region fallthrough
CT: control target
= control target key end

     0   :  { %11 = vsyncpa [#allocation4], 0  ;;  %s2338_s21 = smov 0   ;;  %s2340_s22 = smov 0   ;;  %s2742_s0 = inlined_call_operand.vmem [shape: f32[2,8,32], index: 0, kind: input, shape index: {}]   ;;  %s2743_s1 = inlined_call_operand.vmem [shape: f32[2,8,128], index: 1, kind: input, shape index: {}]   ;;  %s2744_s2 = inlined_call_operand.vmem [shape: bf16[2,32,96], index: 2, kind: input, shape index: {}]   ;;  %s2745_s3 = inlined_call_operand.vmem [shape: bf16[2,32,32], index: 3, kind: input, shape index: {}]   ;;  %s2746_s4 = inlined_call_operand.vmem [shape: bf16[2,32,128], index: 4, kind: input, shape index: {}]   ;;  %s2747_s5 = inlined_call_operand.vmem [shape: bf16[2,128,32], index: 5, kind: input, shape index: {}]   ;;  %s2748_s6 = inlined_call_operand.hbm [shape: bf16[2,8,32], index: 6, kind: output, shape index: {}]  }
   0x1   :  { %s2342_s23 = smov 0  }
   0x2 LB: > { %s1877_s24 = sadd.s32 4294967295, %s2289_s23   ;;  %s26_s25 = sadd.s32 1, %s2285_s22  ;;  %s2289_s23 = sphi %s2342_s23, %s17_s23   ;;  %s2285_s22 = sphi %s2340_s22, %s2753_s22   ;;  %s2281_s21 = sphi %s2338_s21, %s2752_s21  }
   0x3   : > { %p27_p0 = scmp.ge.s32.totalorder %s26_s25, 2  ;;  %p1881_p1 = scmp.ge.s32.totalorder %s2289_s23, 1 }
   0x4   : > { %p275_p2 = scmp.lt.s32.totalorder %s2289_s23, 3 }
   0x5   : > { %s2755_s25 = smov (%p27_p0, %s26_s25), 0 }
   0x6   : > { %p276_p3 = pnand %p1881_p1, %p275_p2 }
   0x7   : > { %p330_p4 = scmp.lt.s32.totalorder (!%p276_p3), %s2281_s21, 1  ;;  %p1891_p5 = scmp.ne.s32.totalorder (!%p276_p3), %s2281_s21, 0 }
   0x8   : > { %279 = sbr.rel (%p276_p3) target bundleno = 2348 (0x92c), region = 44 }
   0xd   : > { %s331_s26 = scalar_select %p330_p4, %s2281_s21, 1 }
   0xf   : > { %s1882_s27 = sshll.u32 %s331_s26, 3  ;;  %s1930_s28 = sshll.u32 %s331_s26, 4 }
  0x10   : > { %s2364_s7 = scalar_lea.vmem %s2743_s1, %s1882_s27  ;;  %s2369_s10 = scalar_lea.vmem %s2744_s2, %s1930_s28 }
  0x11   : > { %s2374_s13 = scalar_lea.vmem %s2745_s3, %s1930_s28  ;;  %s2379_s16 = scalar_lea.vmem %s2746_s4, %s1930_s28 }
  0x12   : > { %s1933_s17 = sshll.u32 %s331_s26, 6  ;;  %359 = sbr.rel (%p1891_p5) target bundleno = 25 (0x19), region = 48 }
  0x13   : > { %s2384_s20 = scalar_lea.vmem %s2747_s5, %s1933_s17 }
  0x17   : > { %v360_v0 = vld [vmem:[%s2742_s0] sm:$0xff]  ;;  %vm362_vm0 = vcmask 261120   ;;  %v361_v1 = vld [vmem:[%s2742_s0 + $0x8] sm:$0xff] }
  0x18   : > { %363 = vst.msk [vmem:[#allocation2] sm:$0xff] %vm362_vm0, %v360_v0  ;;  %364 = vst.msk [vmem:[#allocation2 + $0x8] sm:$0xff] %vm362_vm0, %v361_v1 }
  0x19 PF: > { %vm368_vm1 = vcmask 261120   ;;  %v2181_v10 = vld [vmem:[%s2369_s10 + $0x8] sm:$0xff]   ;;  %v2291_v11 = vmov 0.0   ;;  %vm2292_vm2 = vmmov 0   ;;  %v2182_v12 = vld [vmem:[%s2369_s10] sm:$0xff]   ;;  %v400_v27 = vlaneseq  ;;  %s2293_s26 = smov 120  }
  0x1a   : > { %1984 = vmatprep.subr.bf16.mxu0 %v2291_v11  ;;  %1988 = vmatprep.mubr.msk.bf16.mxu0 %vm2292_vm2, %v2291_v11  ;;  %v2422_v30 = vld [vmem:[%s2364_s7] sm:$0xff]  ;;  %s2294_s28 = smov 104   ;;  %s2295_s7 = smov 96   ;;  %vm524_vm3 = vcmask 64512   ;;  %vm1030_vm5 = vcmask 1043456   ;;  %vm1436_vm6 = vcmask 130048  }
  0x1b   : > { %1985 = vmatpush3.bf16.msra.mxu0 %v2181_v10  ;;  %2004 = vmatprep.subr.bf16.mxu1 %v2291_v11  ;;  %v2418_v28 = vshrl.u32 %v400_v27, 7  ;;  %s2296_s9 = smov 112   ;;  %s2297_s10 = smov 64   ;;  %vm1439_vm7 = vcmask 195584  }
  0x1c   : > { %1986 = vmatprep.subr.bf16.mxu0 %v2291_v11  ;;  %2006 = vmatprep.mubr.msk.bf16.mxu1 %vm2292_vm2, %v2291_v11  ;;  %s2298_s11 = smov 8   ;;  %s2299_s12 = smov 16  }
  0x1d   : > { %v402_v29 = vsub.s32 0, %v2418_v28  ;;  %v408_v35 = vsub.s32 1, %v2418_v28  ;;  %v419_v45 = vsub.s32 2, %v2418_v28  ;;  %s2300_s14 = smov 24   ;;  %p1925_p6 = scmp.ne.s32.totalorder %s2281_s21, 1 }
  0x1f   : > { %v2393_v2 = vld [vmem:[#allocation2] sm:$0xff]  ;;  %v2395_v3 = vld [vmem:[#allocation2 + $0x8] sm:$0xff]  ;;  %1987 = vmatpush3.bf16.msra.mxu0 %v2182_v12  ;;  %v403_v34 = vrot.slane %v2422_v30, %v402_v29  ;;  %v409_v40 = vrot.slane %v2422_v30, %v408_v35  ;;  %v420_v46 = vrot.slane %v2422_v30, %v419_v45 }
  0x20   : > { %v369_v4 = vsel %vm368_vm1, %v2393_v2, 0.0  ;;  %v378_v5 = vmul.f32 %v2393_v2, %v2393_v2  ;;  %v372_v6 = vsel %vm368_vm1, %v2395_v3, 0.0  ;;  %v379_v7 = vmul.f32 %v2395_v3, %v2395_v3  ;;  %1992 = vmatprep.subr.bf16.mxu0 %v2291_v11 }
  0x21   : > { %370 = vadd.xlane.f32.xlu0 %v369_v4 }
  0x22   : > { %v380_v8 = vsel %vm368_vm1, %v378_v5, 0.0  ;;  %v383_v9 = vsel %vm368_vm1, %v379_v7, 0.0 }
  0x23   : > { %381 = vadd.xlane.f32.xlu1 %v380_v8 }
  0x25   : > { %373 = vadd.xlane.f32.xlu0 %v372_v6 }
  0x27   : > { %384 = vadd.xlane.f32.xlu1 %v383_v9 }
  0xaa   : > { %v371_v13 = vpop.xlane.xlu0 %370 }
  0xab   : > { %v376_v14 = vmul.f32 0.03125, %v371_v13 }
  0xac   : > { %v382_v15 = vpop.xlane.xlu1 %381 }
  0xad   : > { %v388_v16 = vmul.f32 %v376_v14, %v376_v14  ;;  %v386_v17 = vmul.f32 0.03125, %v382_v15  ;;  %v394_v31 = vsub.f32 %v2393_v2, %v376_v14 }
  0xae   : > { %v374_v18 = vpop.xlane.xlu0 %373 }
  0xaf   : > { %v390_v19 = vsub.f32 %v386_v17, %v388_v16  ;;  %v377_v20 = vmul.f32 0.03125, %v374_v18 }
  0xb0   : > { %v385_v21 = vpop.xlane.xlu1 %384 }
  0xb1   : > { %v392_v22 = vadd.f32 1e-05, %v390_v19  ;;  %v389_v23 = vmul.f32 %v377_v20, %v377_v20  ;;  %v387_v24 = vmul.f32 0.03125, %v385_v21  ;;  %v395_v36 = vsub.f32 %v2395_v3, %v377_v20 }
  0xb3   : > { %2195 = vrsqrt.f32 %v392_v22  ;;  %v391_v25 = vsub.f32 %v387_v24, %v389_v23 }
  0xb5   : > { %v393_v26 = vadd.f32 1e-05, %v391_v25 }
  0xb7   : > { %2197 = vrsqrt.f32 %v393_v26 }
  0xc0   : > { %v2196_v32 = vpop.eup %2195 }
  0xc1   : > { %v398_v33 = vmul.f32 %v2196_v32, %v394_v31 }
  0xc3   : > { %v404_v39 = vmul.f32 %v403_v34, %v398_v33 }
  0xc4   : > { %v2198_v37 = vpop.eup %2197 }
  0xc5   : > { %v399_v38 = vmul.f32 %v2198_v37, %v395_v36  ;;  %v410_v42 = vadd.f32 %v409_v40, %v404_v39 }
  0xc7   : > { %v405_v41 = vmul.f32 %v403_v34, %v399_v38 }
  0xc9   : > { %v411_v43 = vadd.f32 %v409_v40, %v405_v41  ;;  %v917_v41 = vand.u32 127, %v400_v27 }
  0xcb   : > { %v412_v44 = vpack.c.bf16 %v411_v43, %v410_v42  ;;  %vm2513_vm4 = vcmp.le.s32.totalorder %v917_v41, %v2418_v28 }
  0xcd   : > { %1989 = vmatmul.mubr.msk.bf16.vlgmr.msra.gmra.mxu0 %vm368_vm1, %v412_v44 }
  0xce   : > { %1994 = vmatprep.mubr.msk.bf16.mxu0 %vm2292_vm2, %v2291_v11 }
 0x18d   : > { %v470_v47 = vpop.f32.mrf.mxu0 }
 0x18e   : > { %v471_v48 = vadd.f32 %v470_v47, %v420_v46 }
 0x18f   : > { %v1990_v49 = vpop.f32.mrf.mxu0 }
 0x190   : > { %479 = vrot.lane.b32.xlu0 %v471_v48, %s2293_s26  ;;  %v2434_v53 = vpack.c.bf16 %v471_v48, %v471_v48  ;;  %v497_v0 = vmul.f32 0.17677669, %v471_v48 }
 0x191   : > { %v473_v50 = vpop.f32.mrf.mxu0 }
 0x192   : > { %v474_v51 = vadd.f32 %v473_v50, %v420_v46  ;;  %v505_v6 = vpack.c.bf16 %v497_v0, %v497_v0 }
 0x193   : > { %v1991_v52 = vpop.f32.mrf.mxu0 }
 0x194   : > { %491 = vrot.lane.b32.xlu0 %v471_v48, %s2294_s28  ;;  %481 = vrot.lane.b32.xlu1 %v474_v51, %s2293_s26  ;;  %v2438_v54 = vpack.c.bf16 %v474_v51, %v474_v51  ;;  %v498_v12 = vmul.f32 0.17677669, %v474_v51 }
 0x196   : > { %v506_v13 = vpack.c.bf16 %v498_v12, %v498_v12 }
 0x198   : > { %522 = vrot.lane.b32.xlu0 %v2434_v53, %s2295_s7  ;;  %485 = vrot.lane.b32.xlu1 %v471_v48, %s2296_s9 }
 0x19c   : > { %487 = vrot.lane.b32.xlu1 %v474_v51, %s2296_s9 }
 0x1a0   : > { %493 = vrot.lane.b32.xlu1 %v474_v51, %s2294_s28 }
 0x1a4   : > { %572 = vrot.lane.b32.xlu1 %v2438_v54, %s2295_s7 }
 0x202   : > { %v480_v55 = vpop.permute.xlu0 %479 }
 0x203   : > { %v2442_v56 = vpack.c.bf16 %v480_v55, %v480_v55  ;;  %v499_v16 = vmul.f32 0.17677669, %v480_v55 }
 0x205   : > { %621 = vrot.lane.b32.xlu0 %v2442_v56, %s2295_s7  ;;  %v507_v19 = vpack.c.bf16 %v499_v16, %v499_v16 }
 0x206   : > { %v2446_v57 = vpop.permute.xlu0 %491  ;;  %v482_v58 = vpop.permute.xlu1 %481 }
 0x207   : > { %v2448_v59 = vpack.c.bf16 %v482_v58, %v482_v58  ;;  %v2460_v4 = vpack.c.bf16 %v2446_v57, %v2446_v57  ;;  %v500_v20 = vmul.f32 0.17677669, %v482_v58  ;;  %v503_v35 = vmul.f32 0.17677669, %v2446_v57 }
 0x209   : > { %670 = vrot.lane.b32.xlu1 %v2448_v59, %s2295_s7  ;;  %v508_v23 = vpack.c.bf16 %v500_v20, %v500_v20  ;;  %v511_v38 = vpack.c.bf16 %v503_v35, %v503_v35 }
 0x20a   : > { %v523_v60 = vpop.permute.xlu0 %522  ;;  %v486_v61 = vpop.permute.xlu1 %485 }
 0x20b   : > { %v529_v62 = vsel %vm524_vm3, %v523_v60, 0  ;;  %v2453_v63 = vpack.c.bf16 %v486_v61, %v486_v61  ;;  %v501_v24 = vmul.f32 0.17677669, %v486_v61 }
 0x20c   : > { %1993 = vmatpush3.bf16.xpose.msra.mxu0 %v529_v62 }
 0x20d   : > { %719 = vrot.lane.b32.xlu0 %v2453_v63, %s2295_s7  ;;  %1998 = vmatprep.subr.bf16.mxu0 %v2291_v11  ;;  %v509_v31 = vpack.c.bf16 %v501_v24, %v501_v24 }
 0x20e   : > { %v488_v1 = vpop.permute.xlu1 %487 }
 0x20f   : > { %v2462_v5 = vpack.c.bf16 %v488_v1, %v488_v1  ;;  %v502_v32 = vmul.f32 0.17677669, %v488_v1 }
 0x211   : > { %817 = vrot.lane.b32.xlu0 %v2460_v4, %s2295_s7  ;;  %768 = vrot.lane.b32.xlu1 %v2462_v5, %s2295_s7  ;;  %v510_v36 = vpack.c.bf16 %v502_v32, %v502_v32 }
 0x212   : > { %v494_v7 = vpop.permute.xlu1 %493 }
 0x213   : > { %v2468_v8 = vpack.c.bf16 %v494_v7, %v494_v7  ;;  %1995 = vmatmul.mubr.msk.bf16.vlgmr.msra.gmra.mxu0 %vm524_vm3, %v505_v6  ;;  %v504_v39 = vmul.f32 0.17677669, %v494_v7 }
 0x214   : > { %2000 = vmatprep.mubr.msk.bf16.mxu0 %vm2292_vm2, %v2291_v11 }
 0x215   : > { %866 = vrot.lane.b32.xlu1 %v2468_v8, %s2295_s7  ;;  %v512_v40 = vpack.c.bf16 %v504_v39, %v504_v39 }
 0x216   : > { %v573_v9 = vpop.permute.xlu1 %572 }
 0x217   : > { %v578_v10 = vsel %vm524_vm3, %v573_v9, 0 }
 0x218   : > { %1999 = vmatpush3.bf16.xpose.msra.mxu0 %v578_v10 }
 0x219   : > { %2010 = vmatprep.subr.bf16.mxu0 %v2291_v11 }
 0x21f   : > { %2001 = vmatmul.mubr.msk.bf16.vlgmr.msra.gmra.mxu0 %vm524_vm3, %v506_v13 }
 0x220   : > { %2012 = vmatprep.mubr.msk.bf16.mxu0 %vm2292_vm2, %v2291_v11 }
 0x277   : > { %v622_v14 = vpop.permute.xlu0 %621 }
 0x278   : > { %v627_v15 = vsel %vm524_vm3, %v622_v14, 0 }
 0x279   : > { %2005 = vmatpush3.bf16.xpose.msra.mxu1 %v627_v15 }
 0x27a   : > { %2016 = vmatprep.subr.bf16.mxu1 %v2291_v11 }
 0x27b   : > { %v671_v17 = vpop.permute.xlu1 %670 }
 0x27c   : > { %v676_v18 = vsel %vm524_vm3, %v671_v17, 0 }
 0x27d   : > { %2011 = vmatpush3.bf16.xpose.msra.mxu0 %v676_v18 }
 0x27e   : > { %2022 = vmatprep.subr.bf16.mxu0 %v2291_v11 }
 0x27f   : > { %v720_v21 = vpop.permute.xlu0 %719 }
 0x280   : > { %v725_v22 = vsel %vm524_vm3, %v720_v21, 0  ;;  %2007 = vmatmul.mubr.msk.bf16.vlgmr.msra.gmra.mxu1 %vm524_vm3, %v507_v19 }
 0x281   : > { %2017 = vmatpush3.bf16.xpose.msra.mxu1 %v725_v22  ;;  %2018 = vmatprep.mubr.msk.bf16.mxu1 %vm2292_vm2, %v2291_v11 }
 0x282   : > { %2028 = vmatprep.subr.bf16.mxu1 %v2291_v11 }
 0x283   : > { %v769_v25 = vpop.permute.xlu1 %768  ;;  %v818_v29 = vpop.permute.xlu0 %817 }
 0x284   : > { %v774_v26 = vsel %vm524_vm3, %v769_v25, 0  ;;  %2013 = vmatmul.mubr.msk.bf16.vlgmr.msra.gmra.mxu0 %vm524_vm3, %v508_v23  ;;  %v823_v33 = vsel %vm524_vm3, %v818_v29, 0 }
 0x285   : > { %2023 = vmatpush3.bf16.xpose.msra.mxu0 %v774_v26  ;;  %2024 = vmatprep.mubr.msk.bf16.mxu0 %vm2292_vm2, %v2291_v11 }
 0x286   : > { %2034 = vmatprep.subr.bf16.mxu0 %v2291_v11 }
 0x287   : > { %v867_v34 = vpop.permute.xlu1 %866 }
 0x288   : > { %2019 = vmatmul.mubr.msk.bf16.vlgmr.msra.gmra.mxu1 %vm524_vm3, %v509_v31  ;;  %v872_v37 = vsel %vm524_vm3, %v867_v34, 0 }
 0x289   : > { %2029 = vmatpush3.bf16.xpose.msra.mxu1 %v823_v33  ;;  %2030 = vmatprep.mubr.msk.bf16.mxu1 %vm2292_vm2, %v2291_v11 }
 0x28a   : > { %2040 = vmatprep.subr.bf16.mxu1 %v2291_v11 }
 0x28c   : > { %2025 = vmatmul.mubr.msk.bf16.vlgmr.msra.gmra.mxu0 %vm524_vm3, %v510_v36 }
 0x28d   : > { %2035 = vmatpush3.bf16.xpose.msra.mxu0 %v872_v37  ;;  %2036 = vmatprep.mubr.msk.bf16.mxu0 %vm2292_vm2, %v2291_v11 }
 0x28e   : > { %2046 = vmatprep.subr.bf16.mxu0 %v2291_v11 }
 0x290   : > { %2031 = vmatmul.mubr.msk.bf16.vlgmr.msra.gmra.mxu1 %vm524_vm3, %v511_v38 }
 0x291   : > { %2042 = vmatprep.mubr.msk.bf16.mxu1 %vm2292_vm2, %v2291_v11 }
 0x294   : > { %2037 = vmatmul.mubr.msk.bf16.vlgmr.msra.gmra.mxu0 %vm524_vm3, %v512_v40 }
 0x295   : > { %2048 = vmatprep.mubr.msk.bf16.mxu0 %vm2292_vm2, %v2291_v11 }
 0x2d3   : > { %v565_v43 = vpop.f32.mrf.mxu0 }
 0x2d4   : > { %v921_v44 = vsel %vm2513_vm4, %v565_v43, -inf }
 0x2d5   : > { %v1996_v45 = vpop.f32.mrf.mxu0  ;;  %v929_v46 = vsel %vm524_vm3, %v921_v44, -inf }
 0x2d6   : > { %930 = vmax.xlane.f32.xlu0 %v929_v46 }
 0x2d7   : > { %v568_v47 = vpop.f32.mrf.mxu0 }
 0x2d9   : > { %v1997_v48 = vpop.f32.mrf.mxu0 }
 0x2df   : > { %v614_v49 = vpop.f32.mrf.mxu0 }
 0x2e0   : > { %v922_v50 = vsel %vm2513_vm4, %v614_v49, -inf }
 0x2e1   : > { %v2002_v27 = vpop.f32.mrf.mxu0  ;;  %v932_v51 = vsel %vm524_vm3, %v922_v50, -inf }
 0x2e2   : > { %933 = vmax.xlane.f32.xlu1 %v932_v51 }
 0x2e3   : > { %v617_v52 = vpop.f32.mrf.mxu0 }
 0x2e5   : > { %v2003_v55 = vpop.f32.mrf.mxu0 }
 0x340   : > { %v663_v57 = vpop.f32.mrf.mxu1 }
 0x341   : > { %v2525_v58 = vsel %vm2513_vm4, %v663_v57, -inf }
 0x342   : > { %v2008_v60 = vpop.f32.mrf.mxu1  ;;  %v935_v61 = vsel %vm524_vm3, %v2525_v58, -inf }
 0x343   : > { %936 = vmax.xlane.f32.xlu0 %v935_v61 }
 0x344   : > { %v666_v62 = vpop.f32.mrf.mxu1  ;;  %v712_v0 = vpop.f32.mrf.mxu0 }
 0x345   : > { %v2531_v1 = vsel %vm2513_vm4, %v712_v0, -inf }
 0x346   : > { %v2009_v6 = vpop.f32.mrf.mxu1  ;;  %v2014_v7 = vpop.f32.mrf.mxu0  ;;  %v938_v9 = vsel %vm524_vm3, %v2531_v1, -inf }
 0x347   : > { %939 = vmax.xlane.f32.xlu0 %v938_v9 }
 0x348   : > { %v715_v10 = vpop.f32.mrf.mxu0  ;;  %v761_v12 = vpop.f32.mrf.mxu1 }
 0x349   : > { %v2537_v13 = vsel %vm2513_vm4, %v761_v12, -inf }
 0x34a   : > { %v2015_v14 = vpop.f32.mrf.mxu0  ;;  %v2020_v15 = vpop.f32.mrf.mxu1  ;;  %v941_v16 = vsel %vm524_vm3, %v2537_v13, -inf }
 0x34b   : > { %942 = vmax.xlane.f32.xlu0 %v941_v16 }
 0x34c   : > { %v764_v17 = vpop.f32.mrf.mxu1  ;;  %v810_v18 = vpop.f32.mrf.mxu0 }
 0x34d   : > { %v926_v19 = vsel %vm2513_vm4, %v810_v18, -inf }
 0x34e   : > { %v2021_v20 = vpop.f32.mrf.mxu1  ;;  %v2026_v21 = vpop.f32.mrf.mxu0  ;;  %v944_v22 = vsel %vm524_vm3, %v926_v19, -inf }
 0x34f   : > { %945 = vmax.xlane.f32.xlu1 %v944_v22 }
 0x350   : > { %v813_v23 = vpop.f32.mrf.mxu0  ;;  %v859_v24 = vpop.f32.mrf.mxu1 }
 0x351   : > { %v2546_v25 = vsel %vm2513_vm4, %v859_v24, -inf }
 0x352   : > { %v2027_v26 = vpop.f32.mrf.mxu0  ;;  %v2032_v29 = vpop.f32.mrf.mxu1  ;;  %v947_v31 = vsel %vm524_vm3, %v2546_v25, -inf }
 0x353   : > { %948 = vmax.xlane.f32.xlu0 %v947_v31 }
 0x354   : > { %v862_v32 = vpop.f32.mrf.mxu1  ;;  %v908_v33 = vpop.f32.mrf.mxu0 }
 0x355   : > { %v928_v43 = vsel %vm2513_vm4, %v908_v33, -inf }
 0x356   : > { %v2033_v34 = vpop.f32.mrf.mxu1  ;;  %v2038_v35 = vpop.f32.mrf.mxu0 }
 0x358   : > { %v911_v36 = vpop.f32.mrf.mxu0 }
 0x35a   : > { %v2039_v37 = vpop.f32.mrf.mxu0 }
 0x35f   : > { %v931_v38 = vpop.xlane.xlu0 %930 }
 0x360   : > { %1074 = vrot.lane.b32.xlu1 %v2438_v54, %s2297_s10  ;;  %v953_v39 = vsub.f32 %v921_v44, %v931_v38  ;;  %v950_v54 = vsel %vm524_vm3, %v928_v43, -inf }
 0x362   : > { %v961_v40 = vmul.f32 1.442695, %v953_v39 }
 0x364   : > { %1122 = vrot.lane.b32.xlu1 %v2442_v56, %s2297_s10  ;;  %2199 = vpow2.f32 %v961_v40 }
 0x369   : > { %1025 = vrot.lane.b32.xlu0 %v2434_v53, %s2297_s10 }
 0x36b   : > { %v934_v53 = vpop.xlane.xlu1 %933 }
 0x36c   : > { %v954_v56 = vsub.f32 %v922_v50, %v934_v53 }
 0x36e   : > { %v963_v44 = vmul.f32 1.442695, %v954_v56 }
 0x370   : > { %2201 = vpow2.f32 %v963_v44 }
 0x371   : > { %v2556_v41 = vpop.eup %2199 }
 0x372   : > { %v977_v45 = vsel %vm524_vm3, %v2556_v41, 0.0 }
 0x37d   : > { %v2565_v46 = vpop.eup %2201 }
 0x37e   : > { %v980_v42 = vsel %vm524_vm3, %v2565_v46, 0.0 }
 0x388   : > { %978 = vadd.xlane.f32.xlu0 %v977_v45  ;;  %951 = vmax.xlane.f32.xlu1 %v950_v54 }
 0x399   : > { %1170 = vrot.lane.b32.xlu1 %v2448_v59, %s2297_s10 }
 0x3bd   : > { %981 = vadd.xlane.f32.xlu1 %v980_v42 }
 0x3cc   : > { %v937_v47 = vpop.xlane.xlu0 %936 }
 0x3cd   : > { %v955_v48 = vsub.f32 %v2525_v58, %v937_v47 }
 0x3ce   : > { %1266 = vrot.lane.b32.xlu1 %v2462_v5, %s2297_s10 }
 0x3cf   : > { %v965_v49 = vmul.f32 1.442695, %v955_v48 }
 0x3d0   : > { %v940_v27 = vpop.xlane.xlu0 %939 }
 0x3d1   : > { %2203 = vpow2.f32 %v965_v49  ;;  %v956_v50 = vsub.f32 %v2531_v1, %v940_v27 }
 0x3d3   : > { %v967_v57 = vmul.f32 1.442695, %v956_v50 }
 0x3d4   : > { %v943_v59 = vpop.xlane.xlu0 %942 }
 0x3d5   : > { %2205 = vpow2.f32 %v967_v57  ;;  %v957_v12 = vsub.f32 %v2537_v13, %v943_v59 }
 0x3d7   : > { %v969_v14 = vmul.f32 1.442695, %v957_v12 }
 0x3d8   : > { %v946_v51 = vpop.xlane.xlu1 %945 }
 0x3d9   : > { %v958_v60 = vsub.f32 %v926_v19, %v946_v51 }
 0x3db   : > { %v971_v0 = vmul.f32 1.442695, %v958_v60 }
 0x3dc   : > { %v949_v52 = vpop.xlane.xlu0 %948  ;;  %v1075_v55 = vpop.permute.xlu1 %1074 }
 0x3dd   : > { %v1080_v61 = vsel %vm1030_vm5, %v1075_v55, 0  ;;  %2207 = vpow2.f32 %v971_v0  ;;  %v959_v15 = vsub.f32 %v2546_v25, %v949_v52 }
 0x3de   : > { %v2574_v62 = vpop.eup %2203  ;;  %2047 = vmatpush3.bf16.msra.mxu0 %v1080_v61  ;;  %2209 = vpow2.f32 %v969_v14 }
 0x3df   : > { %v983_v5 = vsel %vm524_vm3, %v2574_v62, 0.0  ;;  %2058 = vmatprep.subr.bf16.mxu0 %v2291_v11  ;;  %v973_v16 = vmul.f32 1.442695, %v959_v15 }
 0x3e0   : > { %984 = vadd.xlane.f32.xlu0 %v983_v5  ;;  %v1026_v58 = vpop.permute.xlu0 %1025  ;;  %v1123_v17 = vpop.permute.xlu1 %1122 }
 0x3e1   : > { %v1032_v1 = vsel %vm1030_vm5, %v1026_v58, 0  ;;  %2211 = vpow2.f32 %v973_v16  ;;  %v1128_v31 = vsel %vm1030_vm5, %v1123_v17, 0 }
 0x3e2   : > { %2041 = vmatpush3.bf16.msra.mxu1 %v1032_v1  ;;  %v2581_v6 = vpop.eup %2205 }
 0x3e3   : > { %2052 = vmatprep.subr.bf16.mxu1 %v2291_v11  ;;  %v986_v7 = vsel %vm524_vm3, %v2581_v6, 0.0 }
 0x3ea   : > { %v2585_v9 = vpop.eup %2207 }
 0x3eb   : > { %v992_v10 = vsel %vm524_vm3, %v2585_v9, 0.0  ;;  %v2593_v18 = vpop.eup %2209 }
 0x3ee   : > { %v2597_v23 = vpop.eup %2211 }
 0x3ef   : > { %v995_v13 = vsel %vm524_vm3, %v2597_v23, 0.0 }
 0x3f2   : > { %987 = vadd.xlane.f32.xlu1 %v986_v7 }
 0x3f6   : > { %1218 = vrot.lane.b32.xlu0 %v2453_v63, %s2297_s10  ;;  %993 = vadd.xlane.f32.xlu1 %v992_v10  ;;  %v989_v63 = vsel %vm524_vm3, %v2593_v18, 0.0 }
 0x411   : > { %v979_v19 = vpop.xlane.xlu0 %978  ;;  %v952_v20 = vpop.xlane.xlu1 %951 }
 0x412   : > { %2213 = vrcp.f32 %v979_v19  ;;  %v960_v21 = vsub.f32 %v928_v43, %v952_v20 }
 0x414   : > { %v975_v22 = vmul.f32 1.442695, %v960_v21 }
 0x415   : > { %990 = vadd.xlane.f32.xlu0 %v989_v63  ;;  %v1171_v33 = vpop.permute.xlu1 %1170 }
 0x416   : > { %2215 = vpow2.f32 %v975_v22  ;;  %v1176_v38 = vsel %vm1030_vm5, %v1171_v33, 0  ;;  %v2183_v33 = vld [vmem:[%s2374_s13 + $0x8] sm:$0xff]  }
 0x419   : > { %996 = vadd.xlane.f32.xlu0 %v995_v13 }
 0x41f   : > { %v2214_v24 = vpop.eup %2213 }
 0x420   : > { %v1009_v25 = vmul.f32 %v2214_v24, %v2556_v41 }
 0x422   : > { %v1017_v26 = vpack.c.bf16 %v1009_v25, %v1009_v25 }
 0x423   : > { %v2602_v29 = vpop.eup %2215 }
 0x424   : > { %2043 = vmatmul.mubr.msk.bf16.vlgmr.msra.gmra.mxu1 %vm524_vm3, %v1017_v26  ;;  %v998_v32 = vsel %vm524_vm3, %v2602_v29, 0.0 }
 0x425   : > { %2053 = vmatpush3.bf16.msra.mxu1 %v1128_v31  ;;  %999 = vadd.xlane.f32.xlu1 %v998_v32 }
 0x426   : > { %2054 = vmatprep.mubr.msk.bf16.mxu1 %vm2292_vm2, %v2291_v11  ;;  %2064 = vmatprep.subr.bf16.mxu1 %v2291_v11 }
 0x42f   : > { %1314 = vrot.lane.b32.xlu0 %v2460_v4, %s2297_s10 }
 0x436   : > { %1362 = vrot.lane.b32.xlu1 %v2468_v8, %s2297_s10 }
 0x446   : > { %v982_v34 = vpop.xlane.xlu1 %981 }
 0x447   : > { %2217 = vrcp.f32 %v982_v34 }
 0x44a   : > { %v1267_v39 = vpop.permute.xlu1 %1266 }
 0x44b   : > { %v1272_v47 = vsel %vm1030_vm5, %v1267_v39, 0 }
 0x454   : > { %v2218_v35 = vpop.eup %2217 }
 0x455   : > { %v1010_v36 = vmul.f32 %v2218_v35, %v2565_v46 }
 0x457   : > { %v1018_v37 = vpack.c.bf16 %v1010_v36, %v1010_v36 }
 0x459   : > { %2049 = vmatmul.mubr.msk.bf16.vlgmr.msra.gmra.mxu0 %vm524_vm3, %v1018_v37 }
 0x45a   : > { %2059 = vmatpush3.bf16.msra.mxu0 %v1176_v38  ;;  %2060 = vmatprep.mubr.msk.bf16.mxu0 %vm2292_vm2, %v2291_v11 }
 0x45b   : > { %2070 = vmatprep.subr.bf16.mxu0 %v2291_v11 }
 0x469   : > { %v985_v4 = vpop.xlane.xlu0 %984 }
 0x46a   : > { %2219 = vrcp.f32 %v985_v4  ;;  %v2184_v4 = vld [vmem:[%s2374_s13] sm:$0xff]  }
 0x46d   : > { %v1219_v41 = vpop.permute.xlu0 %1218 }
 0x46e   : > { %v1224_v54 = vsel %vm1030_vm5, %v1219_v41, 0 }
 0x477   : > { %v2220_v8 = vpop.eup %2219 }
 0x478   : > { %v1011_v40 = vmul.f32 %v2220_v8, %v2574_v62 }
 0x47a   : > { %v1019_v43 = vpack.c.bf16 %v1011_v40, %v1011_v40 }
 0x47b   : > { %v988_v45 = vpop.xlane.xlu1 %987 }
 0x47c   : > { %2221 = vrcp.f32 %v988_v45  ;;  %2055 = vmatmul.mubr.msk.bf16.vlgmr.msra.gmra.mxu1 %vm524_vm3, %v1019_v43 }
 0x47d   : > { %2065 = vmatpush3.bf16.msra.mxu1 %v1224_v54  ;;  %2066 = vmatprep.mubr.msk.bf16.mxu1 %vm2292_vm2, %v2291_v11 }
 0x47e   : > { %2076 = vmatprep.subr.bf16.mxu1 %v2291_v11 }
 0x47f   : > { %v994_v53 = vpop.xlane.xlu1 %993 }
 0x480   : > { %2223 = vrcp.f32 %v994_v53 }
 0x489   : > { %v2222_v56 = vpop.eup %2221 }
 0x48a   : > { %v1012_v44 = vmul.f32 %v2222_v56, %v2581_v6 }
 0x48c   : > { %v1020_v46 = vpack.c.bf16 %v1012_v44, %v1012_v44 }
 0x48d   : > { %v2224_v42 = vpop.eup %2223 }
 0x48e   : > { %2061 = vmatmul.mubr.msk.bf16.vlgmr.msra.gmra.mxu0 %vm524_vm3, %v1020_v46  ;;  %v1014_v48 = vmul.f32 %v2224_v42, %v2585_v9 }
 0x48f   : > { %2071 = vmatpush3.bf16.msra.mxu0 %v1272_v47  ;;  %2072 = vmatprep.mubr.msk.bf16.mxu0 %vm2292_vm2, %v2291_v11 }
 0x490   : > { %2082 = vmatprep.subr.bf16.mxu0 %v2291_v11  ;;  %v1022_v49 = vpack.c.bf16 %v1014_v48, %v1014_v48 }
 0x496   : > { %2073 = vmatmul.mubr.msk.bf16.vlgmr.msra.gmra.mxu0 %vm524_vm3, %v1022_v49 }
 0x497   : > { %2084 = vmatprep.mubr.msk.bf16.mxu0 %vm2292_vm2, %v2291_v11 }
 0x49e   : > { %v991_v27 = vpop.xlane.xlu0 %990 }
 0x49f   : > { %2225 = vrcp.f32 %v991_v27 }
 0x4a2   : > { %v997_v59 = vpop.xlane.xlu0 %996 }
 0x4a3   : > { %2227 = vrcp.f32 %v997_v59 }
 0x4a6   : > { %v1315_v52 = vpop.permute.xlu0 %1314 }
 0x4a7   : > { %v1320_v61 = vsel %vm1030_vm5, %v1315_v52, 0 }
 0x4ac   : > { %v2226_v51 = vpop.eup %2225 }
 0x4ad   : > { %v1013_v50 = vmul.f32 %v2226_v51, %v2593_v18 }
 0x4ae   : > { %v1000_v55 = vpop.xlane.xlu1 %999 }
 0x4af   : > { %2229 = vrcp.f32 %v1000_v55  ;;  %v1021_v57 = vpack.c.bf16 %v1013_v50, %v1013_v50 }
 0x4b0   : > { %v2228_v60 = vpop.eup %2227 }
 0x4b1   : > { %2067 = vmatmul.mubr.msk.bf16.vlgmr.msra.gmra.mxu1 %vm524_vm3, %v1021_v57  ;;  %v1015_v58 = vmul.f32 %v2228_v60, %v2597_v23 }
 0x4b2   : > { %2077 = vmatpush3.bf16.msra.mxu1 %v1320_v61  ;;  %v1363_v62 = vpop.permute.xlu1 %1362  ;;  %2078 = vmatprep.mubr.msk.bf16.mxu1 %vm2292_vm2, %v2291_v11 }
 0x4b3   : > { %v1368_v5 = vsel %vm1030_vm5, %v1363_v62, 0  ;;  %2088 = vmatprep.subr.bf16.mxu1 %v2291_v11  ;;  %v1023_v0 = vpack.c.bf16 %v1015_v58, %v1015_v58 }
 0x4b4   : > { %2083 = vmatpush3.bf16.msra.mxu0 %v1368_v5  ;;  %v1507_v5 = vsub.s32 3, %v2418_v28 }
 0x4b5   : > { %2096 = vmatprep.subr.bf16.mxu0 %v2291_v11 }
 0x4b6   : > { %v1508_v58 = vrot.slane %v2422_v30, %v1507_v5 }
 0x4b9   : > { %2079 = vmatmul.mubr.msk.bf16.vlgmr.msra.gmra.mxu1 %vm524_vm3, %v1023_v0 }
 0x4ba   : > { %2092 = vmatprep.mubr.msk.bf16.mxu1 %vm2292_vm2, %v2291_v11  ;;  %2089 = vmatpush3.bf16.msra.mxu1 %v2183_v33 }
 0x4bb   : > { %2090 = vmatprep.subr.bf16.mxu1 %v2291_v11 }
 0x4bc   : > { %v2230_v1 = vpop.eup %2229 }
 0x4bd   : > { %v1016_v6 = vmul.f32 %v2230_v1, %v2602_v29 }
 0x4be   : > { %2091 = vmatpush3.bf16.msra.mxu1 %v2184_v4 }
 0x4bf   : > { %v1024_v7 = vpack.c.bf16 %v1016_v6, %v1016_v6  ;;  %2104 = vmatprep.subr.bf16.mxu1 %v2291_v11 }
 0x4c1   : > { %2085 = vmatmul.mubr.msk.bf16.vlgmr.msra.gmra.mxu0 %vm524_vm3, %v1024_v7 }
 0x4c2   : > { %2100 = vmatprep.mubr.msk.bf16.mxu0 %vm2292_vm2, %v2291_v11 }
 0x4e4   : > { %v1068_v9 = vpop.f32.mrf.mxu1 }
 0x4e6   : > { %v2044_v10 = vpop.f32.mrf.mxu1 }
 0x4e8   : > { %v1071_v12 = vpop.f32.mrf.mxu1 }
 0x4ea   : > { %v2045_v14 = vpop.f32.mrf.mxu1 }
 0x519   : > { %v1116_v15 = vpop.f32.mrf.mxu0 }
 0x51b   : > { %v2050_v16 = vpop.f32.mrf.mxu0 }
 0x51d   : > { %v1119_v17 = vpop.f32.mrf.mxu0 }
 0x51f   : > { %v2051_v18 = vpop.f32.mrf.mxu0 }
 0x53c   : > { %v1164_v19 = vpop.f32.mrf.mxu1 }
 0x53e   : > { %v2056_v20 = vpop.f32.mrf.mxu1 }
 0x53f   : > { %v2186_v20 = vld [vmem:[%s2379_s16] sm:$0xff]  }
 0x540   : > { %v1167_v21 = vpop.f32.mrf.mxu1 }
 0x541   : > { %v2187_v21 = vld [vmem:[%s2384_s20 + $0x38] sm:$0xff]  }
 0x542   : > { %v2057_v22 = vpop.f32.mrf.mxu1 }
 0x54e   : > { %v1212_v63 = vpop.f32.mrf.mxu0 }
 0x54f   : > { %v2166_v23 = vpack.i.bf16 %v1212_v63, %v1164_v19  ;;  %v2185_v19 = vld [vmem:[%s2379_s16 + $0x8] sm:$0xff]  }
 0x550   : > { %v2062_v13 = vpop.f32.mrf.mxu0  ;;  %2097 = vmatpush3.bf16.msra.mxu0 %v2185_v19 }
 0x551   : > { %2167 = vrot.lane.b32.xlu0 %v2166_v23, %s2298_s11  ;;  %2098 = vmatprep.subr.bf16.mxu0 %v2291_v11 }
 0x552   : > { %v1215_v24 = vpop.f32.mrf.mxu0 }
 0x554   : > { %v2063_v25 = vpop.f32.mrf.mxu0  ;;  %2099 = vmatpush3.bf16.msra.mxu0 %v2186_v20 }
 0x556   : > { %v1308_v26 = vpop.f32.mrf.mxu0 }
 0x558   : > { %v2074_v29 = vpop.f32.mrf.mxu0 }
 0x55a   : > { %v1311_v31 = vpop.f32.mrf.mxu0 }
 0x55c   : > { %v2075_v32 = vpop.f32.mrf.mxu0 }
 0x571   : > { %v1260_v34 = vpop.f32.mrf.mxu1 }
 0x572   : > { %v2171_v35 = vpack.i.bf16 %v1308_v26, %v1260_v34 }
 0x573   : > { %v2068_v36 = vpop.f32.mrf.mxu1 }
 0x574   : > { %2172 = vrot.lane.b32.xlu1 %v2171_v35, %s2299_s12 }
 0x575   : > { %v1263_v37 = vpop.f32.mrf.mxu1 }
 0x576   : > { %v1543_v37 = vsub.s32 4, %v2418_v28 }
 0x577   : > { %v2069_v38 = vpop.f32.mrf.mxu1 }
 0x579   : > { %v1356_v8 = vpop.f32.mrf.mxu1 }
 0x57b   : > { %v2080_v39 = vpop.f32.mrf.mxu1 }
 0x57c   : > { %v1544_v39 = vrot.slane %v2422_v30, %v1543_v37 }
 0x57d   : > { %v1359_v40 = vpop.f32.mrf.mxu1 }
 0x57e   : > { %v1549_v40 = vsub.s32 5, %v2418_v28 }
 0x57f   : > { %v2081_v41 = vpop.f32.mrf.mxu1 }
 0x581   : > { %v1404_v43 = vpop.f32.mrf.mxu0 }
 0x582   : > { %v2176_v45 = vpack.i.bf16 %v1404_v43, %v1356_v8 }
 0x583   : > { %v2086_v54 = vpop.f32.mrf.mxu0 }
 0x584   : > { %2177 = vrot.lane.b32.xlu0 %v2176_v45, %s2300_s14 }
 0x585   : > { %v1407_v53 = vpop.f32.mrf.mxu0 }
 0x586   : > { %v1550_v53 = vrot.slane %v2422_v30, %v1549_v40 }
 0x587   : > { %v2087_v56 = vpop.f32.mrf.mxu0 }
 0x5c3   : > { %v2168_v44 = vpop.permute.xlu0 %2167 }
 0x5c4   : > { %v2170_v42 = vunpack.i.h.bf16 %v2168_v44  ;;  %v2169_v47 = vunpack.i.l.bf16 %v2168_v44 }
 0x5c6   : > { %v1435_v59 = vsel %vm524_vm3, %v1116_v15, %v2170_v42  ;;  %v1434_v51 = vsel %vm524_vm3, %v1068_v9, %v2169_v47  ;;  %v2188_v47 = vld [vmem:[%s2384_s20 + $0x30] sm:$0xff]  }
 0x5e6   : > { %v2173_v46 = vpop.permute.xlu1 %2172 }
 0x5e7   : > { %v2175_v48 = vunpack.i.h.bf16 %v2173_v46  ;;  %v2174_v49 = vunpack.i.l.bf16 %v2173_v46 }
 0x5e9   : > { %v1438_v55 = vsel %vm1436_vm6, %v1435_v59, %v2175_v48  ;;  %v1437_v57 = vsel %vm1436_vm6, %v1434_v51, %v2174_v49  ;;  %v2189_v48 = vld [vmem:[%s2384_s20 + $0x28] sm:$0xff]   ;;  %v2190_v49 = vld [vmem:[%s2384_s20 + $0x20] sm:$0xff]   ;;  %v2192_v59 = vld [vmem:[%s2384_s20 + $0x10] sm:$0xff]  }
 0x5ea   : > { %v2193_v51 = vld [vmem:[%s2384_s20 + $0x8] sm:$0xff]  }
 0x5f6   : > { %v2178_v27 = vpop.permute.xlu0 %2177 }
 0x5f7   : > { %v2180_v50 = vunpack.i.h.bf16 %v2178_v27  ;;  %v2179_v52 = vunpack.i.l.bf16 %v2178_v27  ;;  %v2191_v27 = vld [vmem:[%s2384_s20 + $0x18] sm:$0xff]  }
 0x5f9   : > { %v1441_v60 = vsel %vm1439_vm7, %v1438_v55, %v2180_v50  ;;  %v1440_v61 = vsel %vm1439_vm7, %v1437_v57, %v2179_v52  ;;  %v2194_v50 = vld [vmem:[%s2384_s20] sm:$0xff]   ;;  %v1560_v52 = vsub.s32 6, %v2418_v28 }
 0x5fa   : > { %v1442_v62 = vpack.c.bf16 %v1441_v60, %v1440_v61 }
 0x5fb   : > { %v1561_v55 = vrot.slane %v2422_v30, %v1560_v52 }
 0x5fc   : > { %2093 = vmatmul.mubr.msk.bf16.vlgmr.msra.gmra.mxu1 %vm368_vm1, %v1442_v62 }
 0x5fd   : > { %2120 = vmatprep.mubr.msk.bf16.mxu1 %vm2292_vm2, %v2291_v11  ;;  %2105 = vmatpush3.bf16.msra.mxu1 %v2187_v21 }
 0x5fe   : > { %2106 = vmatprep.subr.bf16.mxu1 %v2291_v11 }
 0x601   : > { %2107 = vmatpush3.bf16.msra.mxu1 %v2188_v47 }
 0x602   : > { %2108 = vmatprep.subr.bf16.mxu1 %v2291_v11 }
 0x605   : > { %2109 = vmatpush3.bf16.msra.mxu1 %v2189_v48 }
 0x606   : > { %2110 = vmatprep.subr.bf16.mxu1 %v2291_v11 }
 0x609   : > { %2111 = vmatpush3.bf16.msra.mxu1 %v2190_v49 }
 0x60a   : > { %2112 = vmatprep.subr.bf16.mxu1 %v2291_v11 }
 0x60d   : > { %2113 = vmatpush3.bf16.msra.mxu1 %v2191_v27 }
 0x60e   : > { %2114 = vmatprep.subr.bf16.mxu1 %v2291_v11 }
 0x611   : > { %2115 = vmatpush3.bf16.msra.mxu1 %v2192_v59 }
 0x612   : > { %2116 = vmatprep.subr.bf16.mxu1 %v2291_v11 }
 0x615   : > { %2117 = vmatpush3.bf16.msra.mxu1 %v2193_v51 }
 0x616   : > { %2118 = vmatprep.subr.bf16.mxu1 %v2291_v11 }
 0x619   : > { %2119 = vmatpush3.bf16.msra.mxu1 %v2194_v50 }
 0x6bc   : > { %v1496_v0 = vpop.f32.mrf.mxu1 }
 0x6bd   : > { %v1503_v1 = vadd.f32 %v1496_v0, %v2393_v2 }
 0x6be   : > { %v2094_v6 = vpop.f32.mrf.mxu1 }
 0x6bf   : > { %v2665_v7 = vadd.f32 %v1508_v58, %v1503_v1 }
 0x6c0   : > { %v1499_v9 = vpop.f32.mrf.mxu1 }
 0x6c1   : > { %v1504_v10 = vadd.f32 %v1499_v9, %v2395_v3  ;;  %v1511_v12 = vsel %vm368_vm1, %v2665_v7, 0.0  ;;  %v1519_v14 = vmul.f32 %v2665_v7, %v2665_v7 }
 0x6c2   : > { %1512 = vadd.xlane.f32.xlu1 %v1511_v12  ;;  %v2095_v15 = vpop.f32.mrf.mxu1 }
 0x6c3   : > { %v2672_v16 = vadd.f32 %v1508_v58, %v1504_v10  ;;  %v1521_v2 = vsel %vm368_vm1, %v1519_v14, 0.0 }
 0x6c4   : > { %1522 = vadd.xlane.f32.xlu0 %v1521_v2 }
 0x6c5   : > { %v1514_v17 = vsel %vm368_vm1, %v2672_v16, 0.0  ;;  %v1520_v3 = vmul.f32 %v2672_v16, %v2672_v16 }
 0x6c7   : > { %v1524_v18 = vsel %vm368_vm1, %v1520_v3, 0.0  ;;  %v1648_v3 = vsub.s32 7, %v2418_v28 }
 0x6c8   : > { %1515 = vadd.xlane.f32.xlu0 %v1514_v17 }
 0x6cc   : > { %1525 = vadd.xlane.f32.xlu0 %v1524_v18  ;;  %v1649_v18 = vrot.slane %v2422_v30, %v1648_v3 }
 0x74b   : > { %v1513_v22 = vpop.xlane.xlu1 %1512 }
 0x74c   : > { %v1517_v63 = vmul.f32 0.03125, %v1513_v22 }
 0x74d   : > { %v1523_v23 = vpop.xlane.xlu0 %1522 }
 0x74e   : > { %v1529_v13 = vmul.f32 %v1517_v63, %v1517_v63  ;;  %v1527_v24 = vmul.f32 0.03125, %v1523_v23  ;;  %v1535_v4 = vsub.f32 %v2665_v7, %v1517_v63 }
 0x750   : > { %v1531_v25 = vsub.f32 %v1527_v24, %v1529_v13 }
 0x751   : > { %v1516_v26 = vpop.xlane.xlu0 %1515 }
 0x752   : > { %v1533_v29 = vadd.f32 1e-05, %v1531_v25  ;;  %v1518_v31 = vmul.f32 0.03125, %v1516_v26 }
 0x754   : > { %2231 = vrsqrt.f32 %v1533_v29  ;;  %v1530_v33 = vmul.f32 %v1518_v31, %v1518_v31  ;;  %v1536_v41 = vsub.f32 %v2672_v16, %v1518_v31 }
 0x755   : > { %v1526_v32 = vpop.xlane.xlu0 %1525 }
 0x756   : > { %v1528_v34 = vmul.f32 0.03125, %v1526_v32 }
 0x758   : > { %v1532_v35 = vsub.f32 %v1528_v34, %v1530_v33 }
 0x75a   : > { %v1534_v36 = vadd.f32 1e-05, %v1532_v35 }
 0x75c   : > { %2233 = vrsqrt.f32 %v1534_v36 }
 0x761   : > { %v2232_v38 = vpop.eup %2231 }
 0x762   : > { %v1539_v8 = vmul.f32 %v2232_v38, %v1535_v4 }
 0x764   : > { %v1545_v54 = vmul.f32 %v1544_v39, %v1539_v8 }
 0x766   : > { %v1551_v44 = vadd.f32 %v1550_v53, %v1545_v54 }
 0x769   : > { %v2234_v43 = vpop.eup %2233 }
 0x76a   : > { %v1540_v45 = vmul.f32 %v2234_v43, %v1536_v41 }
 0x76c   : > { %v1546_v56 = vmul.f32 %v1544_v39, %v1540_v45 }
 0x76e   : > { %v1552_v46 = vadd.f32 %v1550_v53, %v1546_v56 }
 0x770   : > { %v1553_v42 = vpack.c.bf16 %v1552_v46, %v1551_v44 }
 0x772   : > { %2101 = vmatmul.mubr.msk.bf16.vlgmr.msra.gmra.mxu0 %vm368_vm1, %v1553_v42 }
 0x832   : > { %v1611_v57 = vpop.f32.mrf.mxu0 }
 0x833   : > { %v1612_v60 = vadd.f32 %v1611_v57, %v1561_v55 }
 0x834   : > { %v2102_v61 = vpop.f32.mrf.mxu0 }
 0x835   : > { %v1621_v62 = vmul.f32 0.70710677, %v1612_v60  ;;  %v1618_v11 = vmul.f32 0.5, %v1612_v60 }
 0x836   : > { %v1614_v5 = vpop.f32.mrf.mxu0 }
 0x837   : > { %2235 = verf.f32 %v1621_v62  ;;  %v1615_v58 = vadd.f32 %v1614_v5, %v1561_v55 }
 0x838   : > { %v2103_v0 = vpop.f32.mrf.mxu0 }
 0x839   : > { %v1622_v1 = vmul.f32 0.70710677, %v1615_v58  ;;  %v1619_v12 = vmul.f32 0.5, %v1615_v58 }
 0x83b   : > { %2237 = verf.f32 %v1622_v1 }
 0x844   : > { %v2236_v6 = vpop.eup %2235 }
 0x845   : > { %v1625_v9 = vadd.f32 1.0, %v2236_v6 }
 0x847   : > { %v1627_v15 = vmul.f32 %v1625_v9, %v1618_v11 }
 0x848   : > { %v2238_v10 = vpop.eup %2237 }
 0x849   : > { %v1626_v14 = vadd.f32 1.0, %v2238_v10 }
 0x84b   : > { %v1628_v2 = vmul.f32 %v1626_v14, %v1619_v12 }
 0x84d   : > { %v1629_v17 = vpack.c.bf16 %v1628_v2, %v1627_v15 }
 0x84f   : > { %2121 = vmatmul.mubr.bf16.vlgmr.msra.gmra.mxu1 %v1629_v17 }
 0x90f   : > { %v1732_v19 = vpop.f32.mrf.mxu1 }
 0x910   : > { %v1733_v20 = vadd.f32 %v1732_v19, %v1649_v18 }
 0x911   : > { %v2122_v21 = vpop.f32.mrf.mxu1 }
 0x912   : > { %v1739_v22 = vadd.f32 %v1733_v20, %v2665_v7 }
 0x913   : > { %v1735_v63 = vpop.f32.mrf.mxu1 }
 0x914   : > { %1741 = vst.msk [vmem:[#allocation2] sm:$0xff] %vm368_vm1, %v1739_v22  ;;  %v1736_v23 = vadd.f32 %v1735_v63, %v1649_v18  ;;  %1746 = sbr.rel (%p1925_p6) target bundleno = 2332 (0x91c), region = 52 }
 0x915   : > { %v2123_v13 = vpop.f32.mrf.mxu1 }
 0x916   : > { %v1740_v24 = vadd.f32 %v1736_v23, %v2672_v16 }
 0x918   : > { %1742 = vst.msk [vmem:[#allocation2 + $0x8] sm:$0xff] %vm368_vm1, %v1740_v24 }
 0x919   : > { %v1747_v28 = vpack.c.bf16 %v1739_v22, %v1739_v22  ;;  %vm1749_vm8 = vcmask 257024   ;;  %v1748_v30 = vpack.c.bf16 %v1740_v24, %v1740_v24 }
 0x91b   : > { %1750 = vst.msk [vmem:[#allocation3] sm:$0xf] %vm1749_vm8, %v1747_v28  ;;  %1751 = vst.msk [vmem:[#allocation3 + $0x4] sm:$0xf] %vm1749_vm8, %v1748_v30 }
 0x91c PF: > { %p2716_p7 = scmp.eq.s32.totalorder %s1877_s24, 1  ;;  %s2301_s15 = smov [#allocation3]  }
 0x91d   : > { %s1761_s16 = sshll.u32 %s2301_s15, 4  ;;  %s1762_s16 = int_to_ptr.vmem [resolvable:$true] %s1761_s16 }
 0x91e   : > { %s2239_s17 = scalar_lea.vmem %s1762_s16, 128  ;;  %p2246_p11 = scmp.lt.s32.totalorder %s1762_s16, %s1762_s16 }
 0x91f   : > { %p2240_p8 = scmp.ne.s32.totalorder %s1762_s16, %s2239_s17  ;;  %p2247_p12 = scmp.lt.s32.totalorder %s2239_s17, %s2239_s17 }
 0x921   : > { %p2241_p9 = pnand %p2240_p8, %p2716_p7  ;;  %p2248_p13 = por %p2247_p12, %p2246_p11 }
 0x923   : > { %p2242_p10 = pneg %p2241_p9 }
 0x925   : > { %p2249_p0 = pnand %p2248_p13, %p2242_p10 }
 0x927   : > { %2252 = shalt.err (!%p2249_p0)
}
 0x928   : > { %s2302_s21 = smov 4  }
 0x929   : > { %2125 = dma.vmem_to_hbm [thread:$0]  (%p2716_p7), %s1762_s16, 128, %s2748_s6, [#allocation4], %s2297_s10, %s2297_s10, %s2302_s21  }
 0x92a   : > { %2276 = dma.done.wait (%p2716_p7), [#allocation4], 128  }
 0x92b   : > { %2278 = vsyncadd (%p2716_p7), [#allocation4], 4294967168 }
 0x92c PF: > { %s17_s23 = sadd.s32 1, %s2289_s23   ;;  %s2752_s21 = smov %s2285_s22 }
 0x92d   : > { %p14_p1 = scmp.ge.s32.totalorder %s17_s23, 4   ;;  %s2753_s22 = smov %s2755_s25 }
 0x92f   :  { %16 = sbr.rel (!%p14_p1) target bundleno = 2 (0x2), region = 95 }
 0x934   :  { %1777 = vsyncpa [#allocation4], 1 }
 0x935   :  { %1779 = vsyncpa [#allocation4 + $0x1], 1 }

</bundles_post_ra>
